<compile_context>
chip_gen: v5e
topology: v5e:2x2
jax: 0.10.0
libtpu: 0.0.40
codegen_flags: <defaults>
</compile_context>

<pallas_src>
import math

import jax
import jax.numpy as jnp
from jax.experimental import pallas as pl
from jax.experimental.pallas import tpu as pltpu

# --- model dims (small, consistent with the module defaults but shrunk) -----
BATCH = 16
INPUT_DIM = 32
MEMORY_SIZE = 128
NUM_HEADS = 4
KEY_DIM = 64
VALUE_DIM = 64


def liquid_memory_kernel(x_ref, wqk_ref, bqk_ref, wvo_ref, bo_ref, out_ref):
    x = x_ref[...]                                              # (bb, D) f32
    xb = x.astype(jnp.bfloat16)

    # ONE fused query+score matmul for all heads: (bb, D) @ (D, H*M).
    scores = jnp.dot(xb, wqk_ref[...],
                     preferred_element_type=jnp.float32) + bqk_ref[...]  # (bb, H*M) f32

    # Per-head (128-lane segment) softmax; slices are 128-aligned (M = 128).
    # Normalize in f32 *before* the fused value/output matmul.
    segs = []
    for h in range(NUM_HEADS):
        s = scores[:, h * MEMORY_SIZE:(h + 1) * MEMORY_SIZE]    # (bb, M)
        m = jnp.max(s, axis=-1, keepdims=True)
        e = jnp.exp(s - m)
        d = jnp.sum(e, axis=-1, keepdims=True)                  # >= 1 -> approx recip safe
        segs.append(e * pl.reciprocal(d, approx=True))
    attn = jnp.concatenate(segs, axis=-1).astype(jnp.bfloat16)  # (bb, H*M), one cast

    # ONE fused value + output-projection matmul: (bb, H*M) @ (H*M, D),
    # which sums over heads implicitly; add bias and residual.
    out_ref[...] = x + jnp.dot(attn, wvo_ref[...],
                               preferred_element_type=jnp.float32) + bo_ref[...]


def liquid_memory_forward(x, wq, bq, mem_keys, mem_values, wo, bo,
                          *, batch_block=None):
    B, D = x.shape
    H, K, V, M = NUM_HEADS, KEY_DIM, VALUE_DIM, MEMORY_SIZE
    scale = 1.0 / math.sqrt(K)

    # ---- wrapper-side fold of the frozen memory buffers (all in f32) --------
    # Wqk[d, h*M + m] = scale * sum_k Wq[d, h*K + k] * mem_keys[m, k]
    wq3 = (wq * scale).reshape(D, H, K)
    wqk = jnp.einsum('dhk,mk->dhm', wq3, mem_keys).reshape(D, H * M)
    bqk = ((bq * scale).reshape(H, K) @ mem_keys.T).reshape(1, H * M)
    # Wvo[h*M + m, d] = sum_v mem_values[m, v] * Wo[h*V + v, d]
    wo3 = wo.reshape(H, V, D)
    wvo = jnp.einsum('mv,hvd->hmd', mem_values, wo3).reshape(H * M, D)

    # Cast MXU operands to bf16 exactly once; biases stay f32.
    wqk = wqk.astype(jnp.bfloat16)
    wvo = wvo.astype(jnp.bfloat16)
    bqk = bqk.astype(jnp.float32)
    bo2 = bo.reshape(1, D).astype(jnp.float32)

    # Single grid step at this size (overhead-bound kernel).  If batch grows,
    # pick bb so H*bb >= 128 (v5e) / 256 (v6e, v7x) to fill MXU rows; VMEM never binds.
    bb = B if batch_block is None else min(batch_block, B)
    assert B % bb == 0, "demo assumes batch divisible by the batch block"
    grid = (B // bb,)

    return pl.pallas_call(
        liquid_memory_kernel,
        out_shape=jax.ShapeDtypeStruct((B, D), jnp.float32),
        grid_spec=pltpu.PrefetchScalarGridSpec(
            num_scalar_prefetch=0,
            grid=grid,
            in_specs=[
                pl.BlockSpec((bb, D), lambda i: (i, 0)),         # x tile
                pl.BlockSpec((D, H * M), lambda i: (0, 0)),      # folded query->score weights
                pl.BlockSpec((1, H * M), lambda i: (0, 0)),      # folded score bias
                pl.BlockSpec((H * M, D), lambda i: (0, 0)),      # folded value->output weights
                pl.BlockSpec((1, D), lambda i: (0, 0)),          # output bias
            ],
            out_specs=pl.BlockSpec((bb, D), lambda i: (i, 0)),
        ),
        compiler_params=pltpu.CompilerParams(
            dimension_semantics=("parallel",)),
    )(x, wqk, bqk, wvo, bo2)


def liquid_memory_reference(x, wq, bq, mem_keys, mem_values, wo, bo):
    q = x @ wq + bq
    q = q.reshape(x.shape[0], NUM_HEADS, KEY_DIM)
    outs = []
    for h in range(NUM_HEADS):
        s = (q[:, h] @ mem_keys.T) / math.sqrt(KEY_DIM)
        w = jax.nn.softmax(s, axis=1)
        outs.append(w @ mem_values)
    combined = jnp.concatenate(outs, axis=1)
    return x + combined @ wo + bo


if __name__ == "__main__":
    key = jax.random.PRNGKey(0)
    k_x, k_wq, k_bq, k_mk, k_mv, k_wo, k_bo = jax.random.split(key, 7)

    x = jax.random.normal(k_x, (BATCH, INPUT_DIM), dtype=jnp.float32)

    # Parameters (deterministic synthetic init; projections stored pre-transposed
    # as [in, out], matching nn.Linear applied as x @ W^T + b).
    wq = jax.random.normal(k_wq, (INPUT_DIM, NUM_HEADS * KEY_DIM), jnp.float32) * 0.05
    bq = jax.random.normal(k_bq, (1, NUM_HEADS * KEY_DIM), jnp.float32) * 0.05
    wo = jax.random.normal(k_wo, (NUM_HEADS * VALUE_DIM, INPUT_DIM), jnp.float32) * 0.05
    bo = jax.random.normal(k_bo, (1, INPUT_DIM), jnp.float32) * 0.05

    # Memory buffers: keys orthogonally initialized (nn.init.orthogonal_),
    # values deterministic non-zero so the attention path is exercised.
    mk_raw = jax.random.normal(k_mk, (MEMORY_SIZE, KEY_DIM), jnp.float32)
    mem_keys, _ = jnp.linalg.qr(mk_raw)
    mem_keys = mem_keys.astype(jnp.float32)                     # (M, K)
    mem_values = jax.random.normal(k_mv, (MEMORY_SIZE, VALUE_DIM), jnp.float32) * 0.1

    out = liquid_memory_forward(x, wq, bq, mem_keys, mem_values, wo, bo)
    out = jax.block_until_ready(out)

    ref = liquid_memory_reference(x, wq, bq, mem_keys, mem_values, wo, bo)
    assert out.shape == (BATCH, INPUT_DIM)
    # bf16 MXU operands + approx reciprocal -> loosened tolerance vs f32 reference.
    assert jnp.allclose(out, ref, atol=2e-2, rtol=2e-2), "mismatch vs reference"

    print("KERNEL_OK")
</pallas_src>

<mosaic_0001>
module attributes {stable_mosaic.version = 11 : i64} {
  func.func @liquid_memory_kernel(%arg0: i32, %arg1: memref<16x32xf32, #tpu.memory_space<vmem>>, %arg2: memref<32x512xbf16, #tpu.memory_space<vmem>>, %arg3: memref<1x512xf32, #tpu.memory_space<vmem>>, %arg4: memref<512x32xbf16, #tpu.memory_space<vmem>>, %arg5: memref<1x32xf32, #tpu.memory_space<vmem>>, %arg6: memref<16x32xf32, #tpu.memory_space<vmem>>) attributes {dimension_semantics = [#tpu.dimension_semantics<parallel>], iteration_bounds = array<i64: 1>, scalar_prefetch = 0 : i64, scratch_operands = 0 : i64, tpu.core_type = #tpu.core_type<tc>, window_params = [{transform_indices = @transform_0, window_bounds = array<i64: 16, 32>}, {pipeline_mode = #tpu.pipeline_mode<synchronous>, transform_indices = @transform_1, window_bounds = array<i64: 32, 512>}, {pipeline_mode = #tpu.pipeline_mode<synchronous>, transform_indices = @transform_2, window_bounds = array<i64: 1, 512>}, {pipeline_mode = #tpu.pipeline_mode<synchronous>, transform_indices = @transform_3, window_bounds = array<i64: 512, 32>}, {pipeline_mode = #tpu.pipeline_mode<synchronous>, transform_indices = @transform_4, window_bounds = array<i64: 1, 32>}, {transform_indices = @transform_5, window_bounds = array<i64: 16, 32>}]} {
    %c0 = arith.constant 0 : index
    %c0_0 = arith.constant 0 : index
    %0 = vector.load %arg1[%c0, %c0_0] : memref<16x32xf32, #tpu.memory_space<vmem>>, vector<16x32xf32>
    %1 = arith.truncf %0 : vector<16x32xf32> to vector<16x32xbf16>
    %c0_1 = arith.constant 0 : index
    %c0_2 = arith.constant 0 : index
    %2 = vector.load %arg2[%c0_1, %c0_2] : memref<32x512xbf16, #tpu.memory_space<vmem>>, vector<32x512xbf16>
    %cst = arith.constant dense<0.000000e+00> : vector<16x512xf32>
    %3 = tpu.matmul %1, %2, %cst {dimension_numbers = #tpu.dot_dimension_numbers<[1], [0], [0], [1], [0, 0, 1, 1], [], []>} : vector<16x32xbf16>, vector<32x512xbf16>, vector<16x512xf32> -> vector<16x512xf32>
    %c0_3 = arith.constant 0 : index
    %c0_4 = arith.constant 0 : index
    %4 = vector.load %arg3[%c0_3, %c0_4] : memref<1x512xf32, #tpu.memory_space<vmem>>, vector<1x512xf32>
    %5 = vector.broadcast %4 : vector<1x512xf32> to vector<16x512xf32>
    %6 = arith.addf %3, %5 : vector<16x512xf32>
    %7 = vector.extract_strided_slice %6 {offsets = [0, 0], sizes = [16, 128], strides = [1, 1]} : vector<16x512xf32> to vector<16x128xf32>
    %cst_5 = arith.constant dense<0xFF800000> : vector<16xf32>
    %8 = vector.multi_reduction <maximumf>, %7, %cst_5 [1] : vector<16x128xf32> to vector<16xf32>
    %9 = vector.shape_cast %8 : vector<16xf32> to vector<16x1xf32>
    %10 = vector.broadcast %9 : vector<16x1xf32> to vector<16x128xf32>
    %11 = arith.subf %7, %10 : vector<16x128xf32>
    %12 = math.exp %11 : vector<16x128xf32>
    %cst_6 = arith.constant dense<0.000000e+00> : vector<16xf32>
    %13 = vector.multi_reduction <add>, %12, %cst_6 [1] : vector<16x128xf32> to vector<16xf32>
    %14 = vector.shape_cast %13 : vector<16xf32> to vector<16x1xf32>
    %15 = tpu.reciprocal %14 {approx = true} : vector<16x1xf32> -> vector<16x1xf32>
    %16 = vector.broadcast %15 : vector<16x1xf32> to vector<16x128xf32>
    %17 = arith.mulf %12, %16 : vector<16x128xf32>
    %18 = vector.extract_strided_slice %6 {offsets = [0, 128], sizes = [16, 128], strides = [1, 1]} : vector<16x512xf32> to vector<16x128xf32>
    %cst_7 = arith.constant dense<0xFF800000> : vector<16xf32>
    %19 = vector.multi_reduction <maximumf>, %18, %cst_7 [1] : vector<16x128xf32> to vector<16xf32>
    %20 = vector.shape_cast %19 : vector<16xf32> to vector<16x1xf32>
    %21 = vector.broadcast %20 : vector<16x1xf32> to vector<16x128xf32>
    %22 = arith.subf %18, %21 : vector<16x128xf32>
    %23 = math.exp %22 : vector<16x128xf32>
    %cst_8 = arith.constant dense<0.000000e+00> : vector<16xf32>
    %24 = vector.multi_reduction <add>, %23, %cst_8 [1] : vector<16x128xf32> to vector<16xf32>
    %25 = vector.shape_cast %24 : vector<16xf32> to vector<16x1xf32>
    %26 = tpu.reciprocal %25 {approx = true} : vector<16x1xf32> -> vector<16x1xf32>
    %27 = vector.broadcast %26 : vector<16x1xf32> to vector<16x128xf32>
    %28 = arith.mulf %23, %27 : vector<16x128xf32>
    %29 = vector.extract_strided_slice %6 {offsets = [0, 256], sizes = [16, 128], strides = [1, 1]} : vector<16x512xf32> to vector<16x128xf32>
    %cst_9 = arith.constant dense<0xFF800000> : vector<16xf32>
    %30 = vector.multi_reduction <maximumf>, %29, %cst_9 [1] : vector<16x128xf32> to vector<16xf32>
    %31 = vector.shape_cast %30 : vector<16xf32> to vector<16x1xf32>
    %32 = vector.broadcast %31 : vector<16x1xf32> to vector<16x128xf32>
    %33 = arith.subf %29, %32 : vector<16x128xf32>
    %34 = math.exp %33 : vector<16x128xf32>
    %cst_10 = arith.constant dense<0.000000e+00> : vector<16xf32>
    %35 = vector.multi_reduction <add>, %34, %cst_10 [1] : vector<16x128xf32> to vector<16xf32>
    %36 = vector.shape_cast %35 : vector<16xf32> to vector<16x1xf32>
    %37 = tpu.reciprocal %36 {approx = true} : vector<16x1xf32> -> vector<16x1xf32>
    %38 = vector.broadcast %37 : vector<16x1xf32> to vector<16x128xf32>
    %39 = arith.mulf %34, %38 : vector<16x128xf32>
    %40 = vector.extract_strided_slice %6 {offsets = [0, 384], sizes = [16, 128], strides = [1, 1]} : vector<16x512xf32> to vector<16x128xf32>
    %cst_11 = arith.constant dense<0xFF800000> : vector<16xf32>
    %41 = vector.multi_reduction <maximumf>, %40, %cst_11 [1] : vector<16x128xf32> to vector<16xf32>
    %42 = vector.shape_cast %41 : vector<16xf32> to vector<16x1xf32>
    %43 = vector.broadcast %42 : vector<16x1xf32> to vector<16x128xf32>
    %44 = arith.subf %40, %43 : vector<16x128xf32>
    %45 = math.exp %44 : vector<16x128xf32>
    %cst_12 = arith.constant dense<0.000000e+00> : vector<16xf32>
    %46 = vector.multi_reduction <add>, %45, %cst_12 [1] : vector<16x128xf32> to vector<16xf32>
    %47 = vector.shape_cast %46 : vector<16xf32> to vector<16x1xf32>
    %48 = tpu.reciprocal %47 {approx = true} : vector<16x1xf32> -> vector<16x1xf32>
    %49 = vector.broadcast %48 : vector<16x1xf32> to vector<16x128xf32>
    %50 = arith.mulf %45, %49 : vector<16x128xf32>
    %51 = tpu.concatenate %17, %28, %39, %50 in 1 : vector<16x128xf32>, vector<16x128xf32>, vector<16x128xf32>, vector<16x128xf32> -> vector<16x512xf32>
    %52 = arith.truncf %51 : vector<16x512xf32> to vector<16x512xbf16>
    %c0_13 = arith.constant 0 : index
    %c0_14 = arith.constant 0 : index
    %53 = vector.load %arg4[%c0_13, %c0_14] : memref<512x32xbf16, #tpu.memory_space<vmem>>, vector<512x32xbf16>
    %cst_15 = arith.constant dense<0.000000e+00> : vector<16x32xf32>
    %54 = tpu.matmul %52, %53, %cst_15 {dimension_numbers = #tpu.dot_dimension_numbers<[1], [0], [0], [1], [0, 0, 1, 1], [], []>} : vector<16x512xbf16>, vector<512x32xbf16>, vector<16x32xf32> -> vector<16x32xf32>
    %55 = arith.addf %0, %54 : vector<16x32xf32>
    %c0_16 = arith.constant 0 : index
    %c0_17 = arith.constant 0 : index
    %56 = vector.load %arg5[%c0_16, %c0_17] : memref<1x32xf32, #tpu.memory_space<vmem>>, vector<1x32xf32>
    %57 = vector.broadcast %56 : vector<1x32xf32> to vector<16x32xf32>
    %58 = arith.addf %55, %57 : vector<16x32xf32>
    %c0_18 = arith.constant 0 : index
    %c0_19 = arith.constant 0 : index
    %59 = vector.load %arg6[%c0_18, %c0_19] : memref<16x32xf32, #tpu.memory_space<vmem>>, vector<16x32xf32>
    tpu.vector_store %arg6[%c0_18, %c0_19], %58 {strides = array<i32>} : memref<16x32xf32, #tpu.memory_space<vmem>>, vector<16x32xf32>,
    return
  }
  func.func @transform_0(%arg0: i32) -> (i32, i32) {
    %c0_i32 = arith.constant 0 : i32
    %c0_i32_0 = arith.constant 0 : i32
    return %arg0, %c0_i32 : i32, i32
  }
  func.func @transform_1(%arg0: i32) -> (i32, i32) {
    %c0_i32 = arith.constant 0 : i32
    %c0_i32_0 = arith.constant 0 : i32
    %c0_i32_1 = arith.constant 0 : i32
    return %c0_i32, %c0_i32_0 : i32, i32
  }
  func.func @transform_2(%arg0: i32) -> (i32, i32) {
    %c0_i32 = arith.constant 0 : i32
    %c0_i32_0 = arith.constant 0 : i32
    %c0_i32_1 = arith.constant 0 : i32
    return %c0_i32, %c0_i32_0 : i32, i32
  }
  func.func @transform_3(%arg0: i32) -> (i32, i32) {
    %c0_i32 = arith.constant 0 : i32
    %c0_i32_0 = arith.constant 0 : i32
    %c0_i32_1 = arith.constant 0 : i32
    return %c0_i32, %c0_i32_0 : i32, i32
  }
  func.func @transform_4(%arg0: i32) -> (i32, i32) {
    %c0_i32 = arith.constant 0 : i32
    %c0_i32_0 = arith.constant 0 : i32
    %c0_i32_1 = arith.constant 0 : i32
    return %c0_i32, %c0_i32_0 : i32, i32
  }
  func.func @transform_5(%arg0: i32) -> (i32, i32) {
    %c0_i32 = arith.constant 0 : i32
    %c0_i32_0 = arith.constant 0 : i32
    return %arg0, %c0_i32 : i32, i32
  }
}

</mosaic_0001>

<bundles_post_ra>
// kernel: tpu_custom_call.1
= control target key start
LH: loop header
LB: loop body
LE: loop exit
PB: predicated region body
PF: predicated region fallthrough
CT: control target
= control target key end

     0   :  { %s1063_s0 = inlined_call_operand.vmem [shape: f32[16,32], index: 0, kind: input, shape index: {}]   ;;  %s1064_s1 = inlined_call_operand.vmem [shape: bf16[32,512], index: 1, kind: input, shape index: {}]   ;;  %s1065_s2 = inlined_call_operand.vmem [shape: f32[1,512], index: 2, kind: input, shape index: {}]   ;;  %s1066_s3 = inlined_call_operand.vmem [shape: bf16[512,32], index: 3, kind: input, shape index: {}]   ;;  %s1067_s4 = inlined_call_operand.vmem [shape: f32[1,32], index: 4, kind: input, shape index: {}]   ;;  %s1068_s5 = inlined_call_operand.hbm [shape: f32[16,32], index: 5, kind: output, shape index: {}]  }
   0x1   :  { %v577_v0 = vld [vmem:[%s1064_s1 + $0x20] sm:$0xf]  ;;  %v729_v1 = vld [vmem:[%s1064_s1 + $0x2c] sm:$0xf0]  ;;  %v585_v2 = vld [vmem:[%s1064_s1 + $0x28] sm:$0xf] }
   0x2   :  { %v578_v3 = vor.u32 %v729_v1, %v577_v0  ;;  %v730_v4 = vld [vmem:[%s1064_s1 + $0x34] sm:$0xf0]  ;;  %v728_v5 = vld [vmem:[%s1064_s1 + $0x2c] sm:$0xf]  ;;  %v587_v6 = vld [vmem:[%s1064_s1 + $0x38] sm:$0xf0] }
   0x3   :  { %v586_v7 = vor.u32 %v730_v4, %v585_v2  ;;  %v590_v8 = vor.u32 %v728_v5, %v587_v6  ;;  %v561_v9 = vld [vmem:[%s1064_s1] sm:$0xf]  ;;  %v725_v10 = vld [vmem:[%s1064_s1 + $0xc] sm:$0xf0]  ;;  %v569_v11 = vld [vmem:[%s1064_s1 + $0x8] sm:$0xf] }
   0x4   :  { %93 = vmatpush.bf16.msra.mxu0 %v578_v3  ;;  %v562_v12 = vor.u32 %v725_v10, %v561_v9  ;;  %v726_v13 = vld [vmem:[%s1064_s1 + $0x14] sm:$0xf0]  ;;  %v724_v14 = vld [vmem:[%s1064_s1 + $0xc] sm:$0xf]  ;;  %v571_v15 = vld [vmem:[%s1064_s1 + $0x18] sm:$0xf0] }
   0x5   :  { %121 = vmatpush.bf16.msra.mxu2 %v586_v7  ;;  %135 = vmatpush.bf16.msra.mxu3 %v590_v8  ;;  %v570_v16 = vor.u32 %v726_v13, %v569_v11  ;;  %v574_v17 = vor.u32 %v724_v14, %v571_v15  ;;  %v727_v18 = vld [vmem:[%s1064_s1 + $0x24] sm:$0xf]  ;;  %v579_v19 = vld [vmem:[%s1064_s1 + $0x30] sm:$0xf0]  ;;  %v908_v22 = vld [vmem:[%s1063_s0 + $0x8] sm:$0xff] }
   0x6   :  { %v903_v20 = vld [vmem:[%s1063_s0] sm:$0xff]  ;;  %v582_v21 = vor.u32 %v727_v18, %v579_v19  ;;  %v563_v24 = vld [vmem:[%s1064_s1 + $0x10] sm:$0xf0] }
   0x7   :  { %v723_v23 = vld [vmem:[%s1064_s1 + $0x4] sm:$0xf]  ;;  %v24_v25 = vpack.c.bf16 %v908_v22, %v903_v20 }
   0x8   :  { %10 = vsyncpa [#allocation3], 0  ;;  %94 = vmatpush.bf16.msra.mxu0 %v562_v12  ;;  %107 = vmatpush.bf16.msra.mxu1 %v582_v21  ;;  %vm83_vm0 = vcmask 261120   ;;  %v566_v26 = vor.u32 %v723_v23, %v563_v24  ;;  %v33_v27 = vld [vmem:[%s1065_s2] sm:$0xf]  ;;  %v738_v51 = vld [vmem:[%s1066_s3 + $0x38] sm:$0xff] }
   0x9   :  { %122 = vmatpush.bf16.msra.mxu2 %v570_v16  ;;  %136 = vmatpush.bf16.msra.mxu3 %v574_v17  ;;  %v35_v28 = vperm.slane %v33_v27, 0  ;;  %v37_v31 = vperm.slane %v33_v27, 2  ;;  %v38_v32 = vperm.slane %v33_v27, 3  ;;  %v36_v44 = vperm.slane %v33_v27, 1  ;;  %v754_v52 = vld [vmem:[%s1066_s3 + $0xb8] sm:$0xff]  ;;  %v737_v54 = vld [vmem:[%s1066_s3 + $0x30] sm:$0xff] }
   0xa   :  { %v762_v53 = vld [vmem:[%s1066_s3 + $0xf8] sm:$0xff]  ;;  %v753_v55 = vld [vmem:[%s1066_s3 + $0xb0] sm:$0xff]  ;;  %v736_v24 = vld [vmem:[%s1066_s3 + $0x28] sm:$0xff]  ;;  %s825_s12 = smov [#allocation2]   ;;  %s547_s16 = sshll.u32 %s1068_s5, 4  ;;  %s548_s16 = int_to_ptr.hbm [resolvable:$true] %s547_s16 }
   0xb   :  { %591 = vmatmul.msk.bf16.vlgmr.msra.gmra.mxu0 %vm83_vm0, %v24_v25  ;;  %v761_v58 = vld [vmem:[%s1066_s3 + $0xf0] sm:$0xff]  ;;  %v760_v27 = vld [vmem:[%s1066_s3 + $0xe8] sm:$0xff]  ;;  %s545_s13 = sshll.u32 %s825_s12, 4  ;;  %s827_s17 = smov 8   ;;  %s546_s13 = int_to_ptr.vmem [resolvable:$true] %s545_s13 }
   0xc   :  { %593 = vmatmul.msk.bf16.vlgmr.msra.gmra.mxu2 %vm83_vm0, %v24_v25  ;;  %594 = vmatmul.msk.bf16.vlgmr.msra.gmra.mxu3 %vm83_vm0, %v24_v25 }
   0xd   :  { %108 = vmatpush.bf16.msra.mxu1 %v566_v26  ;;  %475 = vmatpush.bf16.msrb.mxu0 %v738_v51  ;;  %v752_v26 = vld [vmem:[%s1066_s3 + $0xa8] sm:$0xff] }
   0xe   :  { %503 = vmatpush.bf16.msrb.mxu2 %v754_v52  ;;  %517 = vmatpush.bf16.msrb.mxu3 %v762_v53 }
  0x10   :  { %592 = vmatmul.msk.bf16.vlgmr.msra.gmra.mxu1 %vm83_vm0, %v24_v25  ;;  %v746_v25 = vld [vmem:[%s1066_s3 + $0x78] sm:$0xff] }
  0x11   :  { %476 = vmatpush.bf16.msrb.mxu0 %v737_v54  ;;  %489 = vmatpush.bf16.msrb.mxu1 %v746_v25  ;;  %v766_v25 = vld [vmem:[%s1067_s4] ss:$0 sm:$0xff]  ;;  %s826_s4 = smov 128  }
  0x12   :  { %504 = vmatpush.bf16.msrb.mxu2 %v753_v55  ;;  %518 = vmatpush.bf16.msrb.mxu3 %v761_v58 }
  0x15   :  { %477 = vmatpush.bf16.msrb.mxu0 %v736_v24 }
  0x16   :  { %505 = vmatpush.bf16.msrb.mxu2 %v752_v26  ;;  %519 = vmatpush.bf16.msrb.mxu3 %v760_v27 }
  0x88   :  { %v96_v29 = vpop.f32.mrf.mxu0 }
  0x89   :  { %v97_v30 = vadd.f32 %v96_v29, %v35_v28  ;;  %v745_v29 = vld [vmem:[%s1066_s3 + $0x70] sm:$0xff] }
  0x8a   :  { %490 = vmatpush.bf16.msrb.mxu1 %v745_v29 }
  0x8b   :  { %143 = vmax.xlane.f32.xlu2 %v97_v30 }
  0x8d   :  { %v110_v39 = vpop.f32.mrf.mxu1 }
  0x8e   :  { %v111_v46 = vadd.f32 %v110_v39, %v36_v44  ;;  %v757_v39 = vld [vmem:[%s1066_s3 + $0xd0] sm:$0xff] }
  0x8f   :  { %v124_v33 = vpop.f32.mrf.mxu2  ;;  %v138_v34 = vpop.f32.mrf.mxu3 }
  0x90   :  { %v125_v35 = vadd.f32 %v124_v33, %v37_v31  ;;  %v139_v36 = vadd.f32 %v138_v34, %v38_v32  ;;  %v98_v37 = vpop.f32.mrf.mxu0  ;;  %v744_v33 = vld [vmem:[%s1066_s3 + $0x68] sm:$0xff]  ;;  %v750_v34 = vld [vmem:[%s1066_s3 + $0x98] sm:$0xff] }
  0x91   :  { %v99_v38 = vadd.f32 %v98_v37, %v35_v28  ;;  %v735_v28 = vld [vmem:[%s1066_s3 + $0x20] sm:$0xff]  ;;  %491 = vmatpush.bf16.msrb.mxu1 %v744_v33 }
  0x92   :  { %197 = vmax.xlane.f32.xlu1 %v139_v36  ;;  %179 = vmax.xlane.f32.xlu0 %v125_v35  ;;  %v743_v37 = vld [vmem:[%s1066_s3 + $0x60] sm:$0xff] }
  0x93   :  { %145 = vmax.xlane.f32.xlu2 %v99_v38  ;;  %478 = vmatpush.bf16.msrb.mxu0 %v735_v28 }
  0x95   :  { %v112_v45 = vpop.f32.mrf.mxu1  ;;  %492 = vmatpush.bf16.msrb.mxu1 %v743_v37 }
  0x96   :  { %v113_v47 = vadd.f32 %v112_v45, %v36_v44  ;;  %v731_v44 = vld [vmem:[%s1066_s3] sm:$0xff]  ;;  %v741_v45 = vld [vmem:[%s1066_s3 + $0x50] sm:$0xff] }
  0x97   :  { %v126_v40 = vpop.f32.mrf.mxu2  ;;  %v140_v41 = vpop.f32.mrf.mxu3 }
  0x98   :  { %v127_v42 = vadd.f32 %v126_v40, %v37_v31  ;;  %v141_v43 = vadd.f32 %v140_v41, %v38_v32  ;;  %v759_v31 = vld [vmem:[%s1066_s3 + $0xe0] sm:$0xff]  ;;  %v734_v32 = vld [vmem:[%s1066_s3 + $0x18] sm:$0xff]  ;;  %v732_v40 = vld [vmem:[%s1066_s3 + $0x8] sm:$0xff] }
  0x99   :  { %520 = vmatpush.bf16.msrb.mxu3 %v759_v31  ;;  %479 = vmatpush.bf16.msrb.mxu0 %v734_v32  ;;  %v742_v41 = vld [vmem:[%s1066_s3 + $0x58] sm:$0xff] }
  0x9a   :  { %199 = vmax.xlane.f32.xlu1 %v141_v43  ;;  %181 = vmax.xlane.f32.xlu0 %v127_v42 }
  0x9b   :  { %493 = vmatpush.bf16.msrb.mxu1 %v742_v41 }
  0x9f   :  { %494 = vmatpush.bf16.msrb.mxu1 %v741_v45 }
  0xa2   :  { %163 = vmax.xlane.f32.xlu1 %v113_v47  ;;  %161 = vmax.xlane.f32.xlu0 %v111_v46 }
  0xfe   :  { %v144_v48 = vpop.xlane.xlu2 %143 }
  0xff   :  { %v147_v49 = vsub.f32 %v97_v30, %v144_v48  ;;  %v751_v30 = vld [vmem:[%s1066_s3 + $0xa0] sm:$0xff]  ;;  %v740_v48 = vld [vmem:[%s1066_s3 + $0x48] sm:$0xff] }
 0x100   :  { %506 = vmatpush.bf16.msrb.mxu2 %v751_v30  ;;  %495 = vmatpush.bf16.msrb.mxu1 %v740_v48 }
 0x101   :  { %v149_v50 = vmul.f32 1.442695, %v147_v49  ;;  %v739_v49 = vld [vmem:[%s1066_s3 + $0x40] sm:$0xff] }
 0x103   :  { %767 = vpow2.f32 %v149_v50 }
 0x104   :  { %507 = vmatpush.bf16.msrb.mxu2 %v750_v34  ;;  %496 = vmatpush.bf16.msrb.mxu1 %v739_v49 }
 0x105   :  { %v198_v56 = vpop.xlane.xlu1 %197  ;;  %v180_v57 = vpop.xlane.xlu0 %179 }
 0x106   :  { %v201_v59 = vsub.f32 %v139_v36, %v198_v56  ;;  %v183_v60 = vsub.f32 %v125_v35, %v180_v57  ;;  %v146_v61 = vpop.xlane.xlu2 %145  ;;  %v758_v35 = vld [vmem:[%s1066_s3 + $0xd8] sm:$0xff]  ;;  %v733_v36 = vld [vmem:[%s1066_s3 + $0x10] sm:$0xff] }
 0x107   :  { %v148_v1 = vsub.f32 %v99_v38, %v146_v61  ;;  %521 = vmatpush.bf16.msrb.mxu3 %v758_v35  ;;  %v749_v38 = vld [vmem:[%s1066_s3 + $0x90] sm:$0xff]  ;;  %480 = vmatpush.bf16.msrb.mxu0 %v733_v36 }
 0x108   :  { %v203_v62 = vmul.f32 1.442695, %v201_v59  ;;  %v185_v63 = vmul.f32 1.442695, %v183_v60  ;;  %508 = vmatpush.bf16.msrb.mxu2 %v749_v38 }
 0x109   :  { %v943_v0 = vpop.eup %767  ;;  %v151_v2 = vmul.f32 1.442695, %v148_v1 }
 0x10a   :  { %769 = vpow2.f32 %v203_v62  ;;  %153 = vadd.xlane.f32.xlu0 %v943_v0 }
 0x10b   :  { %771 = vpow2.f32 %v185_v63  ;;  %522 = vmatpush.bf16.msrb.mxu3 %v757_v39  ;;  %481 = vmatpush.bf16.msrb.mxu0 %v732_v40 }
 0x10c   :  { %773 = vpow2.f32 %v151_v2 }
 0x10d   :  { %v200_v3 = vpop.xlane.xlu1 %199  ;;  %v182_v4 = vpop.xlane.xlu0 %181 }
 0x10e   :  { %v202_v5 = vsub.f32 %v141_v43, %v200_v3  ;;  %v184_v6 = vsub.f32 %v127_v42, %v182_v4  ;;  %v748_v42 = vld [vmem:[%s1066_s3 + $0x88] sm:$0xff] }
 0x10f   :  { %v756_v43 = vld [vmem:[%s1066_s3 + $0xc8] sm:$0xff]  ;;  %509 = vmatpush.bf16.msrb.mxu2 %v748_v42  ;;  %482 = vmatpush.bf16.msrb.mxu0 %v731_v44 }
 0x110   :  { %v946_v7 = vpop.eup %769  ;;  %v205_v8 = vmul.f32 1.442695, %v202_v5  ;;  %v187_v9 = vmul.f32 1.442695, %v184_v6  ;;  %523 = vmatpush.bf16.msrb.mxu3 %v756_v43 }
 0x111   :  { %v948_v10 = vpop.eup %771  ;;  %207 = vadd.xlane.f32.xlu1 %v946_v7 }
 0x112   :  { %775 = vpow2.f32 %v205_v8  ;;  %189 = vadd.xlane.f32.xlu2 %v948_v10  ;;  %v952_v15 = vpop.eup %773 }
 0x113   :  { %777 = vpow2.f32 %v187_v9 }
 0x115   :  { %v164_v11 = vpop.xlane.xlu1 %163  ;;  %v162_v12 = vpop.xlane.xlu0 %161 }
 0x116   :  { %v166_v13 = vsub.f32 %v113_v47, %v164_v11  ;;  %v165_v14 = vsub.f32 %v111_v46, %v162_v12  ;;  %v747_v46 = vld [vmem:[%s1066_s3 + $0x80] sm:$0xff] }
 0x117   :  { %v755_v47 = vld [vmem:[%s1066_s3 + $0xc0] sm:$0xff]  ;;  %510 = vmatpush.bf16.msrb.mxu2 %v747_v46 }
 0x118   :  { %v954_v16 = vpop.eup %775  ;;  %v169_v17 = vmul.f32 1.442695, %v166_v13  ;;  %v167_v18 = vmul.f32 1.442695, %v165_v14  ;;  %524 = vmatpush.bf16.msrb.mxu3 %v755_v47 }
 0x119   :  { %v956_v19 = vpop.eup %777  ;;  %155 = vadd.xlane.f32.xlu1 %v952_v15 }
 0x11a   :  { %779 = vpow2.f32 %v169_v17  ;;  %209 = vadd.xlane.f32.xlu2 %v954_v16  ;;  %191 = vadd.xlane.f32.xlu0 %v956_v19 }
 0x11b   :  { %781 = vpow2.f32 %v167_v18 }
 0x120   :  { %v961_v21 = vpop.eup %779 }
 0x121   :  { %v963_v23 = vpop.eup %781 }
 0x122   :  { %171 = vadd.xlane.f32.xlu2 %v963_v23  ;;  %173 = vadd.xlane.f32.xlu0 %v961_v21 }
 0x17d   :  { %v154_v51 = vpop.xlane.xlu0 %153 }
 0x17e   :  { %783 = vrcp.f32 %v154_v51 }
 0x184   :  { %v208_v50 = vpop.xlane.xlu1 %207  ;;  %v784_v56 = vpop.eup %783 }
 0x185   :  { %v190_v52 = vpop.xlane.xlu2 %189  ;;  %785 = vrcp.f32 %v208_v50  ;;  %v159_v61 = vmul.f32 %v784_v56, %v943_v0 }
 0x186   :  { %787 = vrcp.f32 %v190_v52 }
 0x18b   :  { %v786_v57 = vpop.eup %785 }
 0x18c   :  { %v156_v53 = vpop.xlane.xlu1 %155  ;;  %v788_v58 = vpop.eup %787  ;;  %v213_v6 = vmul.f32 %v786_v57, %v946_v7 }
 0x18d   :  { %v192_v54 = vpop.xlane.xlu0 %191  ;;  %789 = vrcp.f32 %v156_v53  ;;  %v210_v55 = vpop.xlane.xlu2 %209  ;;  %v195_v3 = vmul.f32 %v788_v58, %v948_v10 }
 0x18e   :  { %791 = vrcp.f32 %v192_v54 }
 0x18f   :  { %793 = vrcp.f32 %v210_v55 }
 0x193   :  { %v790_v59 = vpop.eup %789 }
 0x194   :  { %v792_v60 = vpop.eup %791  ;;  %v160_v62 = vmul.f32 %v790_v59, %v952_v15 }
 0x195   :  { %v794_v63 = vpop.eup %793  ;;  %v174_v1 = vpop.xlane.xlu0 %173  ;;  %v196_v4 = vmul.f32 %v792_v60, %v956_v19 }
 0x196   :  { %v172_v2 = vpop.xlane.xlu2 %171  ;;  %795 = vrcp.f32 %v174_v1  ;;  %v215_v5 = vpack.c.bf16 %v160_v62, %v159_v61  ;;  %v214_v8 = vmul.f32 %v794_v63, %v954_v16 }
 0x197   :  { %797 = vrcp.f32 %v172_v2  ;;  %v217_v9 = vpack.c.bf16 %v196_v4, %v195_v3 }
 0x198   :  { %483 = vmatmul.bf16.vlgmr.msrb.gmra.mxu0 %v215_v5  ;;  %v218_v11 = vpack.c.bf16 %v214_v8, %v213_v6 }
 0x199   :  { %511 = vmatmul.bf16.vlgmr.msrb.gmra.mxu2 %v217_v9 }
 0x19a   :  { %525 = vmatmul.bf16.vlgmr.msrb.gmra.mxu3 %v218_v11 }
 0x19c   :  { %v796_v0 = vpop.eup %795 }
 0x19d   :  { %v798_v12 = vpop.eup %797  ;;  %v178_v13 = vmul.f32 %v796_v0, %v961_v21 }
 0x19e   :  { %v177_v10 = vmul.f32 %v798_v12, %v963_v23 }
 0x1a0   :  { %v216_v14 = vpack.c.bf16 %v178_v13, %v177_v10 }
 0x1a2   :  { %497 = vmatmul.bf16.vlgmr.msrb.gmra.mxu1 %v216_v14 }
 0x215   :  { %v484_v15 = vpop.f32.mrf.mxu0 }
 0x21c   :  { %v512_v17 = vpop.f32.mrf.mxu2 }
 0x21d   :  { %v526_v19 = vpop.f32.mrf.mxu3  ;;  %v486_v27 = vpop.f32.mrf.mxu0 }
 0x21f   :  { %v498_v18 = vpop.f32.mrf.mxu1 }
 0x220   :  { %v499_v7 = vadd.f32 %v498_v18, %v484_v15 }
 0x222   :  { %v513_v16 = vadd.f32 %v512_v17, %v499_v7 }
 0x224   :  { %v527_v24 = vadd.f32 %v526_v19, %v513_v16  ;;  %v514_v23 = vpop.f32.mrf.mxu2 }
 0x225   :  { %v528_v31 = vpop.f32.mrf.mxu3 }
 0x226   :  { %v531_v26 = vadd.f32 %v527_v24, %v903_v20 }
 0x227   :  { %v500_v28 = vpop.f32.mrf.mxu1 }
 0x228   :  { %v537_v21 = vadd.f32 %v766_v25, %v531_v26  ;;  %v501_v29 = vadd.f32 %v500_v28, %v486_v27 }
 0x22a   :  { %539 = vst.msk [vmem:[#allocation2] sm:$0xff] %vm83_vm0, %v537_v21  ;;  %v515_v30 = vadd.f32 %v514_v23, %v501_v29 }
 0x22c   :  { %v529_v32 = vadd.f32 %v528_v31, %v515_v30 }
 0x22e   :  { %v532_v33 = vadd.f32 %v529_v32, %v908_v22 }
 0x230   :  { %v538_v20 = vadd.f32 %v766_v25, %v532_v33 }
 0x232   :  { %540 = vst.msk [vmem:[#allocation2 + $0x8] sm:$0xff] %vm83_vm0, %v538_v20 }
 0x233   :  { %553 = dma.vmem_to_hbm [thread:$0]  %s546_s13, 256, %s548_s16, [#allocation3], %s826_s4, %s826_s4, %s827_s17  }
 0x234   :  { %823 = dma.done.wait [#allocation3], 256  }
 0x235   :  { %824 = vsyncadd [#allocation3], 4294967040 }
 0x236   :  { %558 = vsyncpa [#allocation3], 1 }

</bundles_post_ra>
